<compile_context>
chip_gen: v7x
topology: tpu7x:2x2x1
jax: 0.10.0
libtpu: 0.0.40
codegen_flags: <defaults>
</compile_context>

<pallas_src>
import jax
import jax.numpy as jnp
from jax.experimental import pallas as pl
from jax.experimental.pallas import tpu as pltpu

_BN_EPS = 1e-5


def _zero_index_map(ndim):
    def index_map():
        return (0,) * ndim
    return index_map


# ----------------------------------------------------------------------------
# Fused kernel: 3 x (dense GCN conv + bias + ReLU + BatchNorm), whole batch
# resident in VMEM, single HBM load of inputs and single store of the output.
# ----------------------------------------------------------------------------
def _dgnn_fused_kernel(x_ref, adj_ref, *rest):
    *param_refs, o_ref = rest
    assert len(param_refs) % 4 == 0
    num_layers = len(param_refs) // 4

    batch = x_ref.shape[0]
    n = x_ref.shape[1]

    # ---- Load adjacency once, add self-loops once, reuse for every layer. ----
    rows = jax.lax.broadcasted_iota(jnp.int32, (n, n), 0)
    cols = jax.lax.broadcasted_iota(jnp.int32, (n, n), 1)
    eye = rows == cols
    adj_hat = [
        jnp.where(eye, jnp.float32(1.0), adj_ref[b].astype(jnp.float32))
        for b in range(batch)
    ]

    # ---- Collapse (B, N) into the matmul M dimension: x_flat is (B*N, C). ----
    x_flat = jnp.concatenate(
        [x_ref[b].astype(jnp.float32) for b in range(batch)], axis=0)

    inv_count = jnp.float32(1.0 / (batch * n))

    for layer in range(num_layers):
        w_ref, b_ref, g_ref, beta_ref = param_refs[4 * layer:4 * layer + 4]
        w = w_ref[...].astype(jnp.float32)
        cin, cout = w.shape

        # GCN conv: A_hat @ (x @ W).  When cin < cout it is cheaper (fewer MXU
        # flops on the N x N aggregation) to reassociate as (A_hat @ x) @ W.
        if cin < cout:
            agg = jnp.concatenate(
                [jnp.dot(adj_hat[b], x_flat[b * n:(b + 1) * n, :],
                         preferred_element_type=jnp.float32)
                 for b in range(batch)], axis=0)                       # (B*N, cin)
            h = jnp.dot(agg, w, preferred_element_type=jnp.float32)   # (B*N, cout)
        else:
            hw = jnp.dot(x_flat, w, preferred_element_type=jnp.float32)  # (B*N, cout)
            h = jnp.concatenate(
                [jnp.dot(adj_hat[b], hw[b * n:(b + 1) * n, :],
                         preferred_element_type=jnp.float32)
                 for b in range(batch)], axis=0)                       # (B*N, cout)

        # Bias (post-aggregation, DenseGCNConv semantics) + ReLU.
        h = jnp.maximum(h + b_ref[...], 0.0)                           # (B*N, cout)

        # BatchNorm1d (training mode): per-channel stats over (batch, nodes),
        # biased variance, eps=1e-5 -- folded into one scale/shift per channel.
        mean = jnp.sum(h, axis=0, keepdims=True) * inv_count           # (1, cout)
        centered = h - mean
        var = jnp.sum(centered * centered, axis=0, keepdims=True) * inv_count
        inv_std = jax.lax.rsqrt(var + _BN_EPS)
        scale = g_ref[...] * inv_std                                    # (1, cout)
        shift = beta_ref[...] - mean * scale                            # (1, cout)
        x_flat = h * scale + shift                                      # (B*N, cout)

    # ---- Single store of the final activation. ----
    for b in range(batch):
        o_ref[b] = x_flat[b * n:(b + 1) * n, :].astype(o_ref.dtype)


def dgnn_forward(x, adj, params):
    """x: (B, N, Cin); adj: (B, N, N); params: list of (w, b, gamma, beta)."""
    # TODO(synk): `mask` argument of the PyTorch module defaults to None; only
    # the mask=None path is implemented here.
    B, N, _ = x.shape
    Cout = params[-1][0].shape[1]

    flat_params = []
    for p in params:
        flat_params.extend(p)

    operands = [x, adj, *flat_params]
    in_specs = [pl.BlockSpec(tuple(op.shape), _zero_index_map(op.ndim))
                for op in operands]

    return pl.pallas_call(
        _dgnn_fused_kernel,
        out_shape=jax.ShapeDtypeStruct((B, N, Cout), x.dtype),
        in_specs=in_specs,
        out_specs=pl.BlockSpec((B, N, Cout), _zero_index_map(3)),
        compiler_params=pltpu.CompilerParams(
            # Whole working set at these shapes is < 64 KiB; stay far inside
            # the scoped-VMEM budget on every generation (incl. v7x's 64 MiB).
            vmem_limit_bytes=16 * 1024 * 1024,
        ),
    )(*operands)


def init_params(key, in_channels, hidden_channels, out_channels):
    dims = [(in_channels, hidden_channels),
            (hidden_channels, hidden_channels),
            (hidden_channels, out_channels)]
    params = []
    for i, (cin, cout) in enumerate(dims):
        k = jax.random.fold_in(key, i)
        limit = (6.0 / (cin + cout)) ** 0.5
        w = jax.random.uniform(k, (cin, cout), jnp.float32, -limit, limit)
        b = jnp.zeros((1, cout), jnp.float32)
        gamma = jnp.ones((1, cout), jnp.float32)
        beta = jnp.zeros((1, cout), jnp.float32)
        params.append((w, b, gamma, beta))
    return params


# Pure-JAX reference (same math) for a sanity check of the fused kernel.
def _reference_forward(x, adj, params):
    n = x.shape[1]
    eye = jnp.eye(n, dtype=jnp.bool_)
    adj_hat = jnp.where(eye[None], 1.0, adj)
    for (w, b, gamma, beta) in params:
        hw = jnp.einsum("bnc,cd->bnd", x, w,
                        precision=jax.lax.Precision.HIGHEST)
        h = jnp.einsum("bij,bjc->bic", adj_hat, hw,
                       precision=jax.lax.Precision.HIGHEST)
        h = jnp.maximum(h + b[None], 0.0)
        mean = jnp.mean(h, axis=(0, 1), keepdims=True)
        var = jnp.mean((h - mean) ** 2, axis=(0, 1), keepdims=True)
        x = (h - mean) * jax.lax.rsqrt(var + _BN_EPS) * gamma[None] + beta[None]
    return x


if __name__ == "__main__":
    key = jax.random.PRNGKey(0)
    B, N = 2, 16
    in_channels, hidden_channels, out_channels = 4, 32, 32

    kx, ka, kp = jax.random.split(key, 3)
    x = jax.random.normal(kx, (B, N, in_channels), jnp.float32)
    # Symmetric 0/1 adjacency (no self loops; kernel adds them).
    a = jax.random.uniform(ka, (B, N, N), jnp.float32)
    adj = (a + jnp.swapaxes(a, 1, 2) > 1.0).astype(jnp.float32)
    adj = adj * (1.0 - jnp.eye(N, dtype=jnp.float32)[None])

    params = init_params(kp, in_channels, hidden_channels, out_channels)

    out = dgnn_forward(x, adj, params)
    out = jax.block_until_ready(out)
    assert out.shape == (B, N, out_channels)

    ref = jax.block_until_ready(_reference_forward(x, adj, params))
    max_err = float(jnp.max(jnp.abs(out - ref)))
    assert max_err < 5e-2, f"max abs error vs reference: {max_err}"

    print("KERNEL_OK")
</pallas_src>

<mosaic_0001>
module attributes {stable_mosaic.version = 11 : i64} {
  func.func @_dgnn_fused_kernel(%arg0: memref<2x16x4xf32, #tpu.memory_space<vmem>>, %arg1: memref<2x16x16xf32, #tpu.memory_space<vmem>>, %arg2: memref<4x32xf32, #tpu.memory_space<vmem>>, %arg3: memref<1x32xf32, #tpu.memory_space<vmem>>, %arg4: memref<1x32xf32, #tpu.memory_space<vmem>>, %arg5: memref<1x32xf32, #tpu.memory_space<vmem>>, %arg6: memref<32x32xf32, #tpu.memory_space<vmem>>, %arg7: memref<1x32xf32, #tpu.memory_space<vmem>>, %arg8: memref<1x32xf32, #tpu.memory_space<vmem>>, %arg9: memref<1x32xf32, #tpu.memory_space<vmem>>, %arg10: memref<32x32xf32, #tpu.memory_space<vmem>>, %arg11: memref<1x32xf32, #tpu.memory_space<vmem>>, %arg12: memref<1x32xf32, #tpu.memory_space<vmem>>, %arg13: memref<1x32xf32, #tpu.memory_space<vmem>>, %arg14: memref<2x16x32xf32, #tpu.memory_space<vmem>>) attributes {dimension_semantics = [], scalar_prefetch = 0 : i64, scratch_operands = 0 : i64, tpu.core_type = #tpu.core_type<tc>} {
    %0 = tpu.iota {dimensions = array<i32: 0>} : vector<16x16xi32>
    %1 = tpu.iota {dimensions = array<i32: 1>} : vector<16x16xi32>
    %2 = arith.cmpi eq, %0, %1 : vector<16x16xi32>
    %c0 = arith.constant 0 : index
    %c0_0 = arith.constant 0 : index
    %c0_1 = arith.constant 0 : index
    %3 = vector.load %arg1[%c0, %c0_0, %c0_1] : memref<2x16x16xf32, #tpu.memory_space<vmem>>, vector<1x16x16xf32>
    %4 = vector.shape_cast %3 : vector<1x16x16xf32> to vector<16x16xf32>
    %cst = arith.constant 1.000000e+00 : f32
    %5 = vector.broadcast %cst : f32 to vector<16x16xf32>
    %6 = arith.select %2, %5, %4 : vector<16x16xi1>, vector<16x16xf32>
    %c1 = arith.constant 1 : index
    %c0_2 = arith.constant 0 : index
    %c0_3 = arith.constant 0 : index
    %7 = vector.load %arg1[%c1, %c0_2, %c0_3] : memref<2x16x16xf32, #tpu.memory_space<vmem>>, vector<1x16x16xf32>
    %8 = vector.shape_cast %7 : vector<1x16x16xf32> to vector<16x16xf32>
    %cst_4 = arith.constant 1.000000e+00 : f32
    %9 = vector.broadcast %cst_4 : f32 to vector<16x16xf32>
    %10 = arith.select %2, %9, %8 : vector<16x16xi1>, vector<16x16xf32>
    %c0_5 = arith.constant 0 : index
    %c0_6 = arith.constant 0 : index
    %c0_7 = arith.constant 0 : index
    %11 = vector.load %arg0[%c0_5, %c0_6, %c0_7] : memref<2x16x4xf32, #tpu.memory_space<vmem>>, vector<1x16x4xf32>
    %12 = vector.shape_cast %11 : vector<1x16x4xf32> to vector<16x4xf32>
    %c1_8 = arith.constant 1 : index
    %c0_9 = arith.constant 0 : index
    %c0_10 = arith.constant 0 : index
    %13 = vector.load %arg0[%c1_8, %c0_9, %c0_10] : memref<2x16x4xf32, #tpu.memory_space<vmem>>, vector<1x16x4xf32>
    %14 = vector.shape_cast %13 : vector<1x16x4xf32> to vector<16x4xf32>
    %15 = tpu.concatenate %12, %14 in 0 : vector<16x4xf32>, vector<16x4xf32> -> vector<32x4xf32>
    %c0_11 = arith.constant 0 : index
    %c0_12 = arith.constant 0 : index
    %16 = vector.load %arg2[%c0_11, %c0_12] : memref<4x32xf32, #tpu.memory_space<vmem>>, vector<4x32xf32>
    %17 = vector.extract_strided_slice %15 {offsets = [0, 0], sizes = [16, 4], strides = [1, 1]} : vector<32x4xf32> to vector<16x4xf32>
    %cst_13 = arith.constant dense<0.000000e+00> : vector<16x4xf32>
    %18 = tpu.matmul %6, %17, %cst_13 {dimension_numbers = #tpu.dot_dimension_numbers<[1], [0], [0], [1], [0, 0, 1, 1], [], []>} : vector<16x16xf32>, vector<16x4xf32>, vector<16x4xf32> -> vector<16x4xf32>
    %19 = vector.extract_strided_slice %15 {offsets = [16, 0], sizes = [16, 4], strides = [1, 1]} : vector<32x4xf32> to vector<16x4xf32>
    %cst_14 = arith.constant dense<0.000000e+00> : vector<16x4xf32>
    %20 = tpu.matmul %10, %19, %cst_14 {dimension_numbers = #tpu.dot_dimension_numbers<[1], [0], [0], [1], [0, 0, 1, 1], [], []>} : vector<16x16xf32>, vector<16x4xf32>, vector<16x4xf32> -> vector<16x4xf32>
    %21 = tpu.concatenate %18, %20 in 0 : vector<16x4xf32>, vector<16x4xf32> -> vector<32x4xf32>
    %cst_15 = arith.constant dense<0.000000e+00> : vector<32x32xf32>
    %22 = tpu.matmul %21, %16, %cst_15 {dimension_numbers = #tpu.dot_dimension_numbers<[1], [0], [0], [1], [0, 0, 1, 1], [], []>} : vector<32x4xf32>, vector<4x32xf32>, vector<32x32xf32> -> vector<32x32xf32>
    %c0_16 = arith.constant 0 : index
    %c0_17 = arith.constant 0 : index
    %23 = vector.load %arg3[%c0_16, %c0_17] : memref<1x32xf32, #tpu.memory_space<vmem>>, vector<1x32xf32>
    %24 = vector.broadcast %23 : vector<1x32xf32> to vector<32x32xf32>
    %25 = arith.addf %22, %24 : vector<32x32xf32>
    %cst_18 = arith.constant 0.000000e+00 : f32
    %26 = vector.broadcast %cst_18 : f32 to vector<32x32xf32>
    %27 = arith.maximumf %25, %26 : vector<32x32xf32>
    %cst_19 = arith.constant dense<0.000000e+00> : vector<32xf32>
    %28 = vector.multi_reduction <add>, %27, %cst_19 [0] : vector<32x32xf32> to vector<32xf32>
    %29 = vector.shape_cast %28 : vector<32xf32> to vector<1x32xf32>
    %cst_20 = arith.constant 3.125000e-02 : f32
    %30 = vector.broadcast %cst_20 : f32 to vector<1x32xf32>
    %31 = arith.mulf %29, %30 : vector<1x32xf32>
    %32 = vector.broadcast %31 : vector<1x32xf32> to vector<32x32xf32>
    %33 = arith.subf %27, %32 : vector<32x32xf32>
    %34 = arith.mulf %33, %33 : vector<32x32xf32>
    %cst_21 = arith.constant dense<0.000000e+00> : vector<32xf32>
    %35 = vector.multi_reduction <add>, %34, %cst_21 [0] : vector<32x32xf32> to vector<32xf32>
    %36 = vector.shape_cast %35 : vector<32xf32> to vector<1x32xf32>
    %cst_22 = arith.constant 3.125000e-02 : f32
    %37 = vector.broadcast %cst_22 : f32 to vector<1x32xf32>
    %38 = arith.mulf %36, %37 : vector<1x32xf32>
    %cst_23 = arith.constant 9.99999974E-6 : f32
    %39 = vector.broadcast %cst_23 : f32 to vector<1x32xf32>
    %40 = arith.addf %38, %39 : vector<1x32xf32>
    %41 = math.rsqrt %40 : vector<1x32xf32>
    %c0_24 = arith.constant 0 : index
    %c0_25 = arith.constant 0 : index
    %42 = vector.load %arg4[%c0_24, %c0_25] : memref<1x32xf32, #tpu.memory_space<vmem>>, vector<1x32xf32>
    %43 = arith.mulf %42, %41 : vector<1x32xf32>
    %c0_26 = arith.constant 0 : index
    %c0_27 = arith.constant 0 : index
    %44 = vector.load %arg5[%c0_26, %c0_27] : memref<1x32xf32, #tpu.memory_space<vmem>>, vector<1x32xf32>
    %45 = arith.mulf %31, %43 : vector<1x32xf32>
    %46 = arith.subf %44, %45 : vector<1x32xf32>
    %47 = vector.broadcast %43 : vector<1x32xf32> to vector<32x32xf32>
    %48 = arith.mulf %27, %47 : vector<32x32xf32>
    %49 = vector.broadcast %46 : vector<1x32xf32> to vector<32x32xf32>
    %50 = arith.addf %48, %49 : vector<32x32xf32>
    %c0_28 = arith.constant 0 : index
    %c0_29 = arith.constant 0 : index
    %51 = vector.load %arg6[%c0_28, %c0_29] : memref<32x32xf32, #tpu.memory_space<vmem>>, vector<32x32xf32>
    %cst_30 = arith.constant dense<0.000000e+00> : vector<32x32xf32>
    %52 = tpu.matmul %50, %51, %cst_30 {dimension_numbers = #tpu.dot_dimension_numbers<[1], [0], [0], [1], [0, 0, 1, 1], [], []>} : vector<32x32xf32>, vector<32x32xf32>, vector<32x32xf32> -> vector<32x32xf32>
    %53 = vector.extract_strided_slice %52 {offsets = [0, 0], sizes = [16, 32], strides = [1, 1]} : vector<32x32xf32> to vector<16x32xf32>
    %cst_31 = arith.constant dense<0.000000e+00> : vector<16x32xf32>
    %54 = tpu.matmul %6, %53, %cst_31 {dimension_numbers = #tpu.dot_dimension_numbers<[1], [0], [0], [1], [0, 0, 1, 1], [], []>} : vector<16x16xf32>, vector<16x32xf32>, vector<16x32xf32> -> vector<16x32xf32>
    %55 = vector.extract_strided_slice %52 {offsets = [16, 0], sizes = [16, 32], strides = [1, 1]} : vector<32x32xf32> to vector<16x32xf32>
    %cst_32 = arith.constant dense<0.000000e+00> : vector<16x32xf32>
    %56 = tpu.matmul %10, %55, %cst_32 {dimension_numbers = #tpu.dot_dimension_numbers<[1], [0], [0], [1], [0, 0, 1, 1], [], []>} : vector<16x16xf32>, vector<16x32xf32>, vector<16x32xf32> -> vector<16x32xf32>
    %57 = tpu.concatenate %54, %56 in 0 : vector<16x32xf32>, vector<16x32xf32> -> vector<32x32xf32>
    %c0_33 = arith.constant 0 : index
    %c0_34 = arith.constant 0 : index
    %58 = vector.load %arg7[%c0_33, %c0_34] : memref<1x32xf32, #tpu.memory_space<vmem>>, vector<1x32xf32>
    %59 = vector.broadcast %58 : vector<1x32xf32> to vector<32x32xf32>
    %60 = arith.addf %57, %59 : vector<32x32xf32>
    %cst_35 = arith.constant 0.000000e+00 : f32
    %61 = vector.broadcast %cst_35 : f32 to vector<32x32xf32>
    %62 = arith.maximumf %60, %61 : vector<32x32xf32>
    %cst_36 = arith.constant dense<0.000000e+00> : vector<32xf32>
    %63 = vector.multi_reduction <add>, %62, %cst_36 [0] : vector<32x32xf32> to vector<32xf32>
    %64 = vector.shape_cast %63 : vector<32xf32> to vector<1x32xf32>
    %cst_37 = arith.constant 3.125000e-02 : f32
    %65 = vector.broadcast %cst_37 : f32 to vector<1x32xf32>
    %66 = arith.mulf %64, %65 : vector<1x32xf32>
    %67 = vector.broadcast %66 : vector<1x32xf32> to vector<32x32xf32>
    %68 = arith.subf %62, %67 : vector<32x32xf32>
    %69 = arith.mulf %68, %68 : vector<32x32xf32>
    %cst_38 = arith.constant dense<0.000000e+00> : vector<32xf32>
    %70 = vector.multi_reduction <add>, %69, %cst_38 [0] : vector<32x32xf32> to vector<32xf32>
    %71 = vector.shape_cast %70 : vector<32xf32> to vector<1x32xf32>
    %cst_39 = arith.constant 3.125000e-02 : f32
    %72 = vector.broadcast %cst_39 : f32 to vector<1x32xf32>
    %73 = arith.mulf %71, %72 : vector<1x32xf32>
    %cst_40 = arith.constant 9.99999974E-6 : f32
    %74 = vector.broadcast %cst_40 : f32 to vector<1x32xf32>
    %75 = arith.addf %73, %74 : vector<1x32xf32>
    %76 = math.rsqrt %75 : vector<1x32xf32>
    %c0_41 = arith.constant 0 : index
    %c0_42 = arith.constant 0 : index
    %77 = vector.load %arg8[%c0_41, %c0_42] : memref<1x32xf32, #tpu.memory_space<vmem>>, vector<1x32xf32>
    %78 = arith.mulf %77, %76 : vector<1x32xf32>
    %c0_43 = arith.constant 0 : index
    %c0_44 = arith.constant 0 : index
    %79 = vector.load %arg9[%c0_43, %c0_44] : memref<1x32xf32, #tpu.memory_space<vmem>>, vector<1x32xf32>
    %80 = arith.mulf %66, %78 : vector<1x32xf32>
    %81 = arith.subf %79, %80 : vector<1x32xf32>
    %82 = vector.broadcast %78 : vector<1x32xf32> to vector<32x32xf32>
    %83 = arith.mulf %62, %82 : vector<32x32xf32>
    %84 = vector.broadcast %81 : vector<1x32xf32> to vector<32x32xf32>
    %85 = arith.addf %83, %84 : vector<32x32xf32>
    %c0_45 = arith.constant 0 : index
    %c0_46 = arith.constant 0 : index
    %86 = vector.load %arg10[%c0_45, %c0_46] : memref<32x32xf32, #tpu.memory_space<vmem>>, vector<32x32xf32>
    %cst_47 = arith.constant dense<0.000000e+00> : vector<32x32xf32>
    %87 = tpu.matmul %85, %86, %cst_47 {dimension_numbers = #tpu.dot_dimension_numbers<[1], [0], [0], [1], [0, 0, 1, 1], [], []>} : vector<32x32xf32>, vector<32x32xf32>, vector<32x32xf32> -> vector<32x32xf32>
    %88 = vector.extract_strided_slice %87 {offsets = [0, 0], sizes = [16, 32], strides = [1, 1]} : vector<32x32xf32> to vector<16x32xf32>
    %cst_48 = arith.constant dense<0.000000e+00> : vector<16x32xf32>
    %89 = tpu.matmul %6, %88, %cst_48 {dimension_numbers = #tpu.dot_dimension_numbers<[1], [0], [0], [1], [0, 0, 1, 1], [], []>} : vector<16x16xf32>, vector<16x32xf32>, vector<16x32xf32> -> vector<16x32xf32>
    %90 = vector.extract_strided_slice %87 {offsets = [16, 0], sizes = [16, 32], strides = [1, 1]} : vector<32x32xf32> to vector<16x32xf32>
    %cst_49 = arith.constant dense<0.000000e+00> : vector<16x32xf32>
    %91 = tpu.matmul %10, %90, %cst_49 {dimension_numbers = #tpu.dot_dimension_numbers<[1], [0], [0], [1], [0, 0, 1, 1], [], []>} : vector<16x16xf32>, vector<16x32xf32>, vector<16x32xf32> -> vector<16x32xf32>
    %92 = tpu.concatenate %89, %91 in 0 : vector<16x32xf32>, vector<16x32xf32> -> vector<32x32xf32>
    %c0_50 = arith.constant 0 : index
    %c0_51 = arith.constant 0 : index
    %93 = vector.load %arg11[%c0_50, %c0_51] : memref<1x32xf32, #tpu.memory_space<vmem>>, vector<1x32xf32>
    %94 = vector.broadcast %93 : vector<1x32xf32> to vector<32x32xf32>
    %95 = arith.addf %92, %94 : vector<32x32xf32>
    %cst_52 = arith.constant 0.000000e+00 : f32
    %96 = vector.broadcast %cst_52 : f32 to vector<32x32xf32>
    %97 = arith.maximumf %95, %96 : vector<32x32xf32>
    %cst_53 = arith.constant dense<0.000000e+00> : vector<32xf32>
    %98 = vector.multi_reduction <add>, %97, %cst_53 [0] : vector<32x32xf32> to vector<32xf32>
    %99 = vector.shape_cast %98 : vector<32xf32> to vector<1x32xf32>
    %cst_54 = arith.constant 3.125000e-02 : f32
    %100 = vector.broadcast %cst_54 : f32 to vector<1x32xf32>
    %101 = arith.mulf %99, %100 : vector<1x32xf32>
    %102 = vector.broadcast %101 : vector<1x32xf32> to vector<32x32xf32>
    %103 = arith.subf %97, %102 : vector<32x32xf32>
    %104 = arith.mulf %103, %103 : vector<32x32xf32>
    %cst_55 = arith.constant dense<0.000000e+00> : vector<32xf32>
    %105 = vector.multi_reduction <add>, %104, %cst_55 [0] : vector<32x32xf32> to vector<32xf32>
    %106 = vector.shape_cast %105 : vector<32xf32> to vector<1x32xf32>
    %cst_56 = arith.constant 3.125000e-02 : f32
    %107 = vector.broadcast %cst_56 : f32 to vector<1x32xf32>
    %108 = arith.mulf %106, %107 : vector<1x32xf32>
    %cst_57 = arith.constant 9.99999974E-6 : f32
    %109 = vector.broadcast %cst_57 : f32 to vector<1x32xf32>
    %110 = arith.addf %108, %109 : vector<1x32xf32>
    %111 = math.rsqrt %110 : vector<1x32xf32>
    %c0_58 = arith.constant 0 : index
    %c0_59 = arith.constant 0 : index
    %112 = vector.load %arg12[%c0_58, %c0_59] : memref<1x32xf32, #tpu.memory_space<vmem>>, vector<1x32xf32>
    %113 = arith.mulf %112, %111 : vector<1x32xf32>
    %c0_60 = arith.constant 0 : index
    %c0_61 = arith.constant 0 : index
    %114 = vector.load %arg13[%c0_60, %c0_61] : memref<1x32xf32, #tpu.memory_space<vmem>>, vector<1x32xf32>
    %115 = arith.mulf %101, %113 : vector<1x32xf32>
    %116 = arith.subf %114, %115 : vector<1x32xf32>
    %117 = vector.broadcast %113 : vector<1x32xf32> to vector<32x32xf32>
    %118 = arith.mulf %97, %117 : vector<32x32xf32>
    %119 = vector.broadcast %116 : vector<1x32xf32> to vector<32x32xf32>
    %120 = arith.addf %118, %119 : vector<32x32xf32>
    %121 = vector.extract_strided_slice %120 {offsets = [0, 0], sizes = [16, 32], strides = [1, 1]} : vector<32x32xf32> to vector<16x32xf32>
    %c0_62 = arith.constant 0 : index
    %c0_63 = arith.constant 0 : index
    %c0_64 = arith.constant 0 : index
    %122 = vector.load %arg14[%c0_62, %c0_63, %c0_64] : memref<2x16x32xf32, #tpu.memory_space<vmem>>, vector<1x16x32xf32>
    %123 = vector.shape_cast %122 : vector<1x16x32xf32> to vector<16x32xf32>
    %124 = vector.shape_cast %121 : vector<16x32xf32> to vector<1x16x32xf32>
    tpu.vector_store %arg14[%c0_62, %c0_63, %c0_64], %124 {strides = array<i32>} : memref<2x16x32xf32, #tpu.memory_space<vmem>>, vector<1x16x32xf32>,
    %125 = vector.extract_strided_slice %120 {offsets = [16, 0], sizes = [16, 32], strides = [1, 1]} : vector<32x32xf32> to vector<16x32xf32>
    %c1_65 = arith.constant 1 : index
    %c0_66 = arith.constant 0 : index
    %c0_67 = arith.constant 0 : index
    %126 = vector.load %arg14[%c1_65, %c0_66, %c0_67] : memref<2x16x32xf32, #tpu.memory_space<vmem>>, vector<1x16x32xf32>
    %127 = vector.shape_cast %126 : vector<1x16x32xf32> to vector<16x32xf32>
    %128 = vector.shape_cast %125 : vector<16x32xf32> to vector<1x16x32xf32>
    tpu.vector_store %arg14[%c1_65, %c0_66, %c0_67], %128 {strides = array<i32>} : memref<2x16x32xf32, #tpu.memory_space<vmem>>, vector<1x16x32xf32>,
    return
  }
}

</mosaic_0001>

<bundles_post_ra>
// kernel: tpu_custom_call.1
= control target key start
LH: loop header
LB: loop body
LE: loop exit
PB: predicated region body
PF: predicated region fallthrough
CT: control target
= control target key end

     0   :  { %19 = vsyncpa [#allocation3], 0  ;;  %s1757_s0 = inlined_call_operand.vmem [shape: f32[2,16,4], index: 0, kind: input, shape index: {}]   ;;  %s1758_s1 = inlined_call_operand.vmem [shape: f32[2,16,16], index: 1, kind: input, shape index: {}]   ;;  %s1759_s2 = inlined_call_operand.hbm [shape: f32[4,32], index: 2, kind: input, shape index: {}]   ;;  %s1760_s3 = inlined_call_operand.vmem [shape: f32[1,32], index: 3, kind: input, shape index: {}]   ;;  %s1761_s4 = inlined_call_operand.vmem [shape: f32[1,32], index: 4, kind: input, shape index: {}]   ;;  %s1762_s5 = inlined_call_operand.hbm [shape: f32[1,32], index: 5, kind: input, shape index: {}]   ;;  %s1763_s6 = inlined_call_operand.hbm [shape: f32[32,32], index: 6, kind: input, shape index: {}]   ;;  %s1764_s7 = inlined_call_operand.hbm [shape: f32[1,32], index: 7, kind: input, shape index: {}]   ;;  %s1765_s8 = inlined_call_operand.vmem [shape: f32[1,32], index: 8, kind: input, shape index: {}]   ;;  %s1766_s9 = inlined_call_operand.vmem [shape: f32[1,32], index: 9, kind: input, shape index: {}]   ;;  %s1767_s10 = inlined_call_operand.vmem [shape: f32[32,32], index: 10, kind: input, shape index: {}]   ;;  %s1768_s11 = inlined_call_operand.vmem [shape: f32[1,32], index: 11, kind: input, shape index: {}]   ;;  %s1769_s12 = inlined_call_operand.vmem [shape: f32[1,32], index: 12, kind: input, shape index: {}]   ;;  %s1770_s13 = inlined_call_operand.vmem [shape: f32[1,32], index: 13, kind: input, shape index: {}]   ;;  %s1771_s14 = inlined_call_operand.hbm [shape: f32[2,16,32], index: 14, kind: output, shape index: {}]  }
   0x1   :  { %20 = vsyncpa [#allocation6], 0 }
   0x2   :  { %21 = vsyncpa [#allocation9], 0 }
   0x3   :  { %22 = vsyncpa [#allocation4], 0  ;;  %s1467_s29 = smov [#allocation5]   ;;  %s1468_s15 = smov [#allocation2]  }
   0x4   :  { %s47_s30 = sshll.u32 %s1467_s29, 4  ;;  %s33_s16 = sshll.u32 %s1468_s15, 4  ;;  %s48_s30 = int_to_ptr.vmem [resolvable:$true] %s47_s30  ;;  %s34_s16 = int_to_ptr.vmem [resolvable:$true] %s33_s16 }
   0x5   :  { %s1349_s19 = scalar_lea.hbm %s1762_s5, 16 }
   0x6   :  { %p1350_p0 = scmp.ne.s32.totalorder %s1762_s5, %s1349_s19  ;;  %p1353_p1 = scmp.lt.u32.totalorder %s1349_s19, %s1762_s5 }
   0x8   :  { %p1355_p2 = pnand %p1353_p1, %p1350_p0 }
   0xa   :  { %1358 = shalt.err (!%p1355_p2)
}
   0xb   :  { %s1359_s24 = scalar_lea.vmem %s48_s30, 16  ;;  %s1363_s25 = scalar_lea.vmem %s48_s30, 32 }
   0xc   :  { %p1360_p3 = scmp.ne.s32.totalorder %s48_s30, %s1359_s24  ;;  %p1364_p4 = scmp.lt.s32.totalorder %s48_s30, %s48_s30 }
   0xd   :  { %p1365_p5 = scmp.lt.s32.totalorder %s1363_s25, %s1359_s24 }
   0xf   :  { %p1366_p6 = por %p1365_p5, %p1364_p4 }
  0x11   :  { %p1367_p7 = pnand %p1366_p6, %p1360_p3 }
  0x13   :  { %1370 = shalt.err (!%p1367_p7)
}
  0x14   :  { %50 = dma.hbm_to_vmem [thread:$0]  %s1762_s5, 16, %s48_s30, [#allocation6]  }
  0x15   :  { %s1371_s15 = scalar_lea.hbm %s1759_s2, 64 }
  0x16   :  { %p1372_p8 = scmp.ne.s32.totalorder %s1759_s2, %s1371_s15  ;;  %p1375_p9 = scmp.lt.u32.totalorder %s1371_s15, %s1759_s2 }
  0x18   :  { %p1377_p10 = pnand %p1375_p9, %p1372_p8 }
  0x1a   :  { %1380 = shalt.err (!%p1377_p10)
}
  0x1b   :  { %s1381_s21 = scalar_lea.vmem %s34_s16, 64  ;;  %p1386_p12 = scmp.lt.s32.totalorder %s34_s16, %s34_s16 }
  0x1c   :  { %p1382_p11 = scmp.ne.s32.totalorder %s34_s16, %s1381_s21  ;;  %p1387_p13 = scmp.lt.s32.totalorder %s1381_s21, %s1381_s21 }
  0x1e   :  { %p1388_p0 = por %p1387_p13, %p1386_p12 }
  0x20   :  { %p1389_p1 = pnand %p1388_p0, %p1382_p11 }
  0x22   :  { %1392 = shalt.err (!%p1389_p1)
}
  0x23   :  { %36 = dma.hbm_to_vmem [thread:$0]  %s1759_s2, 64, %s34_s16, [#allocation3]  }
  0x24   :  { %s1469_s22 = smov [#allocation7]   ;;  %s1393_s26 = scalar_lea.hbm %s1763_s6, 512 }
  0x25   :  { %s56_s23 = sshll.u32 %s1469_s22, 4  ;;  %p1394_p2 = scmp.ne.s32.totalorder %s1763_s6, %s1393_s26  ;;  %s57_s23 = int_to_ptr.vmem [resolvable:$true] %s56_s23 }
  0x26   :  { %p1397_p3 = scmp.lt.u32.totalorder %s1393_s26, %s1763_s6 }
  0x28   :  { %p1399_p4 = pnand %p1397_p3, %p1394_p2 }
  0x2a   :  { %1402 = shalt.err (!%p1399_p4)
}
  0x2b   :  { %s1403_s17 = scalar_lea.vmem %s57_s23, 512  ;;  %p1408_p6 = scmp.lt.s32.totalorder %s57_s23, %s57_s23 }
  0x2c   :  { %p1404_p5 = scmp.ne.s32.totalorder %s57_s23, %s1403_s17  ;;  %p1409_p7 = scmp.lt.s32.totalorder %s1403_s17, %s1403_s17 }
  0x2e   :  { %p1410_p8 = por %p1409_p7, %p1408_p6 }
  0x30   :  { %p1411_p9 = pnand %p1410_p8, %p1404_p5 }
  0x32   :  { %1414 = shalt.err (!%p1411_p9)
}
  0x33   :  { %s1470_s2 = smov 128   ;;  %s1471_s16 = smov 8  }
  0x34   :  { %62 = dma.hbm_to_vmem [thread:$0]  %s1763_s6, 512, %s57_s23, [#allocation6], %s1470_s2, %s1470_s2, %s1471_s16  }
  0x35   :  { %s1472_s20 = smov [#allocation8]   ;;  %s1415_s22 = scalar_lea.hbm %s1764_s7, 16 }
  0x36   :  { %s69_s21 = sshll.u32 %s1472_s20, 4  ;;  %p1416_p10 = scmp.ne.s32.totalorder %s1764_s7, %s1415_s22  ;;  %s70_s21 = int_to_ptr.vmem [resolvable:$true] %s69_s21 }
  0x37   :  { %p1419_p11 = scmp.lt.u32.totalorder %s1415_s22, %s1764_s7 }
  0x39   :  { %p1421_p12 = pnand %p1419_p11, %p1416_p10 }
  0x3b   :  { %1424 = shalt.err (!%p1421_p12)
}
  0x3c   :  { %s1425_s28 = scalar_lea.vmem %s70_s21, 16  ;;  %s1429_s6 = scalar_lea.vmem %s70_s21, 32 }
  0x3d   :  { %p1426_p13 = scmp.ne.s32.totalorder %s70_s21, %s1425_s28  ;;  %p1430_p0 = scmp.lt.s32.totalorder %s70_s21, %s70_s21 }
  0x3e   :  { %p1431_p1 = scmp.lt.s32.totalorder %s1429_s6, %s1425_s28 }
  0x40   :  { %p1432_p2 = por %p1431_p1, %p1430_p0 }
  0x42   :  { %p1433_p3 = pnand %p1432_p2, %p1426_p13 }
  0x44   :  { %1436 = shalt.err (!%p1433_p3)
}
  0x45   :  { %72 = dma.hbm_to_vmem [thread:$0]  %s1764_s7, 16, %s70_s21, [#allocation9]  }
  0x46   :  { %1459 = dma.done.wait [#allocation3], 64  }
  0x47   :  { %1460 = vsyncadd [#allocation3], 4294967232 }
  0x48   :  { %1461 = dma.done.wait [#allocation6], 528  }
  0x49   :  { %1462 = vsyncadd [#allocation6], 4294966768 }
  0x4a   :  { %1463 = dma.done.wait [#allocation9], 16  }
  0x4b   :  { %1464 = vsyncadd [#allocation9], 4294967280  ;;  %v97_v0 = vlaneseq  ;;  %vm119_vm1 = vcmask 130048   ;;  %v113_v4 = vld [vmem:[%s1757_s0] sm:$0xff]  ;;  %v114_v5 = vld [vmem:[%s1757_s0 + $0x8] sm:$0xff]  ;;  %vm302_vm3 = vcmask 1043456  }
  0x4c   :  { %v104_v6 = vld [vmem:[%s1758_s1] sm:$0xff]  ;;  %v1296_v7 = vpack.c.bf16 %v114_v5, %v113_v4  ;;  %v1143_v9 = vld [vmem:[%s1757_s0 + $0x10] sm:$0xff]  ;;  %v1144_v10 = vld [vmem:[%s1757_s0 + $0x18] sm:$0xff]  ;;  %vm289_vm4 = vcmask 31744   ;;  %vm395_vm5 = vcmask 261120   ;;  %s1473_s26 = smov [#allocation10]  }
  0x4d   :  { %v1600_v1 = vshrl.u32 %v97_v0, 7  ;;  %v101_v2 = vand.u32 127, %v97_v0  ;;  %v105_v11 = vld [vmem:[%s1758_s1 + $0x8] sm:$0xff]  ;;  %v1300_v12 = vpack.c.bf16 %v1144_v10, %v1143_v9  ;;  %v1141_v13 = vld [vmem:[%s1758_s1 + $0x10] sm:$0xff]  ;;  %v1142_v14 = vld [vmem:[%s1758_s1 + $0x18] sm:$0xff]  ;;  %s1127_s27 = sshll.u32 %s1473_s26, 4  ;;  %s1128_s27 = int_to_ptr.vmem [resolvable:$true] %s1127_s27 }
  0x4e   :  { %1297 = vmatprep.subr.bf16.mxu0 %v1296_v7  ;;  %v118_v18 = vld [vmem:[#allocation2] sm:$0xf]  ;;  %v459_v23 = vld [vmem:[#allocation7] sm:$0xff]  ;;  %v460_v24 = vld [vmem:[#allocation7 + $0x8] sm:$0xff]  ;;  %p1442_p5 = scmp.lt.s32.totalorder %s1128_s27, %s1128_s27 }
  0x4f   :  { %v99_v3 = vadd.s32 8, %v1600_v1  ;;  %vm102_vm0 = vcmp.eq.s32.totalorder %v1600_v1, %v101_v2  ;;  %1299 = vmatpush3.bf16.msra.mxu0 %v1296_v7  ;;  %1301 = vmatprep.subr.bf16.mxu1 %v1300_v12  ;;  %v1304_v25 = vpack.c.bf16 %v460_v24, %v459_v23  ;;  %v461_v26 = vld [vmem:[#allocation7 + $0x10] sm:$0xff]  ;;  %v462_v27 = vld [vmem:[#allocation7 + $0x18] sm:$0xff] }
  0x50   :  { %v1615_v8 = vsel %vm102_vm0, 1.0, %v104_v6  ;;  %v1636_v15 = vsel %vm102_vm0, 1.0, %v1141_v13  ;;  %1303 = vmatpush3.bf16.msra.mxu1 %v1300_v12  ;;  %1232 = vmatprep.subr.msk.mxu0 %vm302_vm3, %v118_v18  ;;  %v1308_v28 = vpack.c.bf16 %v462_v27, %v461_v26  ;;  %v1149_v29 = vld [vmem:[%s1760_s3] ss:$0 sm:$0xff]  ;;  %v436_v24 = vld [vmem:[#allocation5] sm:$0x1] }
  0x51   :  { %vm103_vm2 = vcmp.eq.s32.totalorder %v99_v3, %v101_v2  ;;  %1222 = vmatprep.mubr.msk.f32.mxu0 %vm119_vm1, %v1615_v8  ;;  %1229 = vmatprep.mubr.msk.f32.mxu1 %vm119_vm1, %v1636_v15 }
  0x52   :  { %v1638_v16 = vsel %vm103_vm2, 1.0, %v105_v11  ;;  %v1642_v17 = vsel %vm103_vm2, 1.0, %v1142_v14  ;;  %1305 = vmatprep.subr.bf16.mxu1 %v1304_v25 }
  0x53   :  { %1223 = vmatmul.mubr.msk.f32.vlgmr.msra.gmra.mrb[0].mxu0 %vm119_vm1, %v1638_v16  ;;  %1230 = vmatmul.mubr.msk.f32.vlgmr.msra.gmra.mrb[0].mxu1 %vm119_vm1, %v1642_v17 }
  0x54   :  { %1233 = vmatpush3.msk.msra.mxu0 %vm302_vm3, %v118_v18  ;;  %1307 = vmatpush3.bf16.msra.mxu1 %v1304_v25 }
  0x55   :  { %1309 = vmatprep.subr.bf16.mxu1 %v1308_v28 }
  0x58   :  { %1311 = vmatpush3.bf16.msra.mxu1 %v1308_v28 }
 0x126   :  { %v1224_v19 = vpop.f32.mrb[0].mxu0  ;;  %v1231_v21 = vpop.f32.mrb[0].mxu1 }
 0x127   :  { %v192_v20 = vpop.f32.mrb[1].mxu0  ;;  %v273_v22 = vpop.f32.mrb[1].mxu1 }
 0x128   :  { %1234 = vmatprep.mubr.msk.f32.mxu0 %vm289_vm4, %v192_v20  ;;  %v434_v20 = vld [vmem:[%s1761_s4] sm:$0x1] }
 0x129   :  { %1235 = vmatmul.mubr.msk.f32.vlgmr.msra.gmra.mrb[2].mxu0 %vm289_vm4, %v1224_v19 }
 0x12a   :  { %1237 = vmatprep.mubr.msk.f32.mxu0 %vm289_vm4, %v273_v22 }
 0x12d   :  { %1238 = vmatmul.mubr.msk.f32.gmra.mrb[4].mxu0 %vm289_vm4, %v1231_v21  ;;  %v1665_v21 = vsub.s32 0, %v1600_v1 }
 0x12e   :  { %1258 = vmatprep.mubr.msk.f32.mxu0 %vm119_vm1, %v1615_v8 }
 0x1fc   :  { %v1236_v30 = vpop.f32.mrb[2].mxu0 }
 0x1fd   :  { %v378_v31 = vadd.f32 %v1236_v30, %v1149_v29  ;;  %v372_v32 = vpop.f32.mrb[3].mxu0 }
 0x1fe   :  { %v373_v33 = vadd.f32 %v1149_v29, %v372_v32 }
 0x1ff   :  { %v392_v34 = vmax.f32 %v378_v31, 0.0 }
 0x200   :  { %v391_v35 = vmax.f32 %v373_v33, 0.0  ;;  %v1239_v36 = vpop.f32.mrb[4].mxu0 }
 0x201   :  { %v388_v37 = vadd.f32 %v1239_v36, %v1149_v29  ;;  %v382_v38 = vpop.f32.mrb[5].mxu0  ;;  %v397_v39 = vsel %vm395_vm5, %v392_v34, 0.0 }
 0x202   :  { %v396_v40 = vsel %vm395_vm5, %v391_v35, 0.0  ;;  %v383_v41 = vadd.f32 %v1149_v29, %v382_v38 }
 0x203   :  { %v394_v42 = vmax.f32 %v388_v37, 0.0  ;;  %v398_v44 = vadd.f32 %v397_v39, %v396_v40 }
 0x204   :  { %v393_v43 = vmax.f32 %v383_v41, 0.0 }
 0x205   :  { %v401_v47 = vsel %vm395_vm5, %v394_v42, 0.0 }
 0x206   :  { %v399_v45 = vsel %vm395_vm5, %v393_v43, 0.0 }
 0x207   :  { %v400_v46 = vadd.f32 %v399_v45, %v398_v44  ;;  %v790_v45 = vld [vmem:[%s1767_s10 + $0x10] sm:$0xff] }
 0x209   :  { %v402_v48 = vadd.f32 %v401_v47, %v400_v46  ;;  %v791_v46 = vld [vmem:[%s1767_s10 + $0x18] sm:$0xff]  ;;  %v1163_v47 = vld [vmem:[#allocation8] ss:$0 sm:$0xff] }
 0x20b   :  { %v403_v49 = vrot.slane %v402_v48, 4 }
 0x20d   :  { %v404_v50 = vadd.f32 %v403_v49, %v402_v48 }
 0x20f   :  { %v405_v51 = vrot.slane %v404_v50, 2 }
 0x211   :  { %v406_v52 = vadd.f32 %v405_v51, %v404_v50 }
 0x213   :  { %v407_v53 = vrot.slane %v406_v52, 1 }
 0x215   :  { %v408_v54 = vadd.f32 %v407_v53, %v406_v52 }
 0x217   :  { %v409_v55 = vmul.f32 0.03125, %v408_v54 }
 0x219   :  { %v410_v56 = vsub.f32 %v391_v35, %v409_v55  ;;  %v411_v57 = vsub.f32 %v392_v34, %v409_v55  ;;  %v412_v58 = vsub.f32 %v393_v43, %v409_v55  ;;  %v413_v59 = vsub.f32 %v394_v42, %v409_v55 }
 0x21b   :  { %v414_v60 = vmul.f32 %v410_v56, %v410_v56  ;;  %v415_v61 = vmul.f32 %v411_v57, %v411_v57  ;;  %v416_v62 = vmul.f32 %v412_v58, %v412_v58  ;;  %v417_v63 = vmul.f32 %v413_v59, %v413_v59 }
 0x21d   :  { %v418_v0 = vsel %vm395_vm5, %v414_v60, 0.0  ;;  %v419_v2 = vsel %vm395_vm5, %v415_v61, 0.0  ;;  %v421_v4 = vsel %vm395_vm5, %v416_v62, 0.0  ;;  %v423_v6 = vsel %vm395_vm5, %v417_v63, 0.0 }
 0x21e   :  { %v420_v3 = vadd.f32 %v419_v2, %v418_v0 }
 0x220   :  { %v422_v5 = vadd.f32 %v421_v4, %v420_v3 }
 0x222   :  { %v424_v7 = vadd.f32 %v423_v6, %v422_v5 }
 0x224   :  { %v425_v9 = vrot.slane %v424_v7, 4 }
 0x226   :  { %v426_v10 = vadd.f32 %v425_v9, %v424_v7 }
 0x228   :  { %v427_v11 = vrot.slane %v426_v10, 2 }
 0x22a   :  { %v428_v12 = vadd.f32 %v427_v11, %v426_v10 }
 0x22c   :  { %v429_v13 = vrot.slane %v428_v12, 1 }
 0x22e   :  { %v430_v14 = vadd.f32 %v429_v13, %v428_v12 }
 0x230   :  { %v431_v18 = vmul.f32 0.03125, %v430_v14 }
 0x232   :  { %v432_v19 = vadd.f32 1e-05, %v431_v18 }
 0x234   :  { %1343 = vrsqrt.f32 %v432_v19 }
 0x23e   :  { %v1344_v22 = vpop.eup %1343 }
 0x23f   :  { %v435_v23 = vmul.f32 %v1344_v22, %v434_v20 }
 0x241   :  { %v437_v25 = vmul.f32 %v435_v23, %v409_v55  ;;  %v443_v26 = vrot.slane %v435_v23, %v1665_v21 }
 0x243   :  { %v447_v27 = vmul.f32 %v443_v26, %v393_v43  ;;  %v438_v28 = vsub.f32 %v436_v24, %v437_v25  ;;  %v448_v29 = vmul.f32 %v443_v26, %v394_v42  ;;  %v445_v30 = vmul.f32 %v443_v26, %v391_v35  ;;  %v788_v42 = vld [vmem:[%s1767_s10] sm:$0xff]  ;;  %v789_v43 = vld [vmem:[%s1767_s10 + $0x8] sm:$0xff] }
 0x244   :  { %v446_v32 = vmul.f32 %v443_v26, %v392_v34  ;;  %v1320_v44 = vpack.c.bf16 %v789_v43, %v788_v42 }
 0x245   :  { %v453_v31 = vrot.slane %v438_v28, %v1665_v21 }
 0x246   :  { %1321 = vmatprep.subr.bf16.mxu1 %v1320_v44 }
 0x247   :  { %v455_v33 = vadd.f32 %v453_v31, %v445_v30  ;;  %v456_v36 = vadd.f32 %v453_v31, %v446_v32  ;;  %v457_v37 = vadd.f32 %v453_v31, %v447_v27  ;;  %v458_v38 = vadd.f32 %v453_v31, %v448_v29 }
 0x249   :  { %1248 = vmatprep.mubr.msk.f32.mxu1 %vm395_vm5, %v455_v33 }
 0x24a   :  { %1249 = vmatmul.mubr.msk.f32.vlgmr.msra.gmra.mrb[2].mxu1 %vm395_vm5, %v456_v36 }
 0x24b   :  { %1251 = vmatprep.mubr.msk.f32.mxu1 %vm395_vm5, %v457_v37  ;;  %1323 = vmatpush3.bf16.msra.mxu1 %v1320_v44 }
 0x24e   :  { %1252 = vmatmul.mubr.msk.f32.gmra.mrb[4].mxu1 %vm395_vm5, %v458_v38 }
 0x31d   :  { %v1250_v1 = vpop.f32.mrb[2].mxu1 }
 0x31e   :  { %v541_v39 = vpop.f32.mrb[3].mxu1 }
 0x31f   :  { %v1312_v40 = vpack.c.bf16 %v1250_v1, %v541_v39 }
 0x321   :  { %v1253_v41 = vpop.f32.mrb[4].mxu1  ;;  %1313 = vmatprep.subr.bf16.mxu0 %v1312_v40 }
 0x322   :  { %v551_v35 = vpop.f32.mrb[5].mxu1  ;;  %1315 = vmatpush3.bf16.msra.mxu0 %v1312_v40  ;;  %v763_v40 = vld [vmem:[%s1765_s8] sm:$0x1] }
 0x323   :  { %v1316_v34 = vpack.c.bf16 %v1253_v41, %v551_v35 }
 0x325   :  { %1259 = vmatmul.mubr.msk.f32.vlgmr.msra.gmra.mrb[6].mxu0 %vm119_vm1, %v1638_v16  ;;  %1317 = vmatprep.subr.bf16.mxu0 %v1316_v34 }
 0x326   :  { %1319 = vmatpush3.bf16.msra.mxu0 %v1316_v34  ;;  %1265 = vmatprep.mubr.msk.f32.mxu0 %vm119_vm1, %v1636_v15  ;;  %v765_v34 = vld [vmem:[%s1766_s9] sm:$0x1] }
 0x329   :  { %1266 = vmatmul.mubr.msk.f32.vlgmr.msra.gmra.mrb[8].mxu0 %vm119_vm1, %v1642_v17 }
 0x32a   :  { %1286 = vmatprep.mubr.msk.f32.mxu0 %vm119_vm1, %v1615_v8  ;;  %v1324_v8 = vpack.c.bf16 %v791_v46, %v790_v45 }
 0x32c   :  { %1325 = vmatprep.subr.bf16.mxu1 %v1324_v8 }
 0x32d   :  { %1327 = vmatpush3.bf16.msra.mxu1 %v1324_v8 }
 0x3f8   :  { %v1260_v48 = vpop.f32.mrb[6].mxu0 }
 0x3f9   :  { %v718_v49 = vadd.f32 %v1260_v48, %v1163_v47  ;;  %v626_v50 = vpop.f32.mrb[7].mxu0 }
 0x3fa   :  { %v717_v51 = vadd.f32 %v1163_v47, %v626_v50 }
 0x3fb   :  { %v722_v52 = vmax.f32 %v718_v49, 0.0 }
 0x3fc   :  { %v721_v53 = vmax.f32 %v717_v51, 0.0  ;;  %v1267_v54 = vpop.f32.mrb[8].mxu0 }
 0x3fd   :  { %v720_v55 = vadd.f32 %v1267_v54, %v1163_v47  ;;  %v701_v56 = vpop.f32.mrb[9].mxu0  ;;  %v726_v57 = vsel %vm395_vm5, %v722_v52, 0.0 }
 0x3fe   :  { %v725_v58 = vsel %vm395_vm5, %v721_v53, 0.0  ;;  %v719_v59 = vadd.f32 %v1163_v47, %v701_v56 }
 0x3ff   :  { %v724_v60 = vmax.f32 %v720_v55, 0.0  ;;  %v727_v62 = vadd.f32 %v726_v57, %v725_v58 }
 0x400   :  { %v723_v61 = vmax.f32 %v719_v59, 0.0  ;;  %v1172_v59 = vld [vmem:[%s1768_s11] ss:$0 sm:$0xff] }
 0x401   :  { %v730_v2 = vsel %vm395_vm5, %v724_v60, 0.0 }
 0x402   :  { %v728_v63 = vsel %vm395_vm5, %v723_v61, 0.0 }
 0x403   :  { %v729_v0 = vadd.f32 %v728_v63, %v727_v62 }
 0x405   :  { %v731_v3 = vadd.f32 %v730_v2, %v729_v0 }
 0x407   :  { %v732_v4 = vrot.slane %v731_v3, 4 }
 0x409   :  { %v733_v5 = vadd.f32 %v732_v4, %v731_v3 }
 0x40b   :  { %v734_v6 = vrot.slane %v733_v5, 2 }
 0x40d   :  { %v735_v7 = vadd.f32 %v734_v6, %v733_v5 }
 0x40f   :  { %v736_v9 = vrot.slane %v735_v7, 1 }
 0x411   :  { %v737_v10 = vadd.f32 %v736_v9, %v735_v7 }
 0x413   :  { %v738_v11 = vmul.f32 0.03125, %v737_v10 }
 0x415   :  { %v739_v12 = vsub.f32 %v721_v53, %v738_v11  ;;  %v740_v13 = vsub.f32 %v722_v52, %v738_v11  ;;  %v741_v14 = vsub.f32 %v723_v61, %v738_v11  ;;  %v742_v18 = vsub.f32 %v724_v60, %v738_v11 }
 0x417   :  { %v743_v19 = vmul.f32 %v739_v12, %v739_v12  ;;  %v744_v20 = vmul.f32 %v740_v13, %v740_v13  ;;  %v745_v22 = vmul.f32 %v741_v14, %v741_v14  ;;  %v746_v23 = vmul.f32 %v742_v18, %v742_v18 }
 0x419   :  { %v747_v24 = vsel %vm395_vm5, %v743_v19, 0.0  ;;  %v748_v25 = vsel %vm395_vm5, %v744_v20, 0.0  ;;  %v750_v27 = vsel %vm395_vm5, %v745_v22, 0.0  ;;  %v752_v29 = vsel %vm395_vm5, %v746_v23, 0.0 }
 0x41a   :  { %v749_v26 = vadd.f32 %v748_v25, %v747_v24 }
 0x41c   :  { %v751_v28 = vadd.f32 %v750_v27, %v749_v26 }
 0x41e   :  { %v753_v30 = vadd.f32 %v752_v29, %v751_v28 }
 0x420   :  { %v754_v31 = vrot.slane %v753_v30, 4 }
 0x422   :  { %v755_v32 = vadd.f32 %v754_v31, %v753_v30 }
 0x424   :  { %v756_v33 = vrot.slane %v755_v32, 2 }
 0x426   :  { %v757_v36 = vadd.f32 %v756_v33, %v755_v32 }
 0x428   :  { %v758_v37 = vrot.slane %v757_v36, 1 }
 0x42a   :  { %v759_v38 = vadd.f32 %v758_v37, %v757_v36 }
 0x42c   :  { %v760_v1 = vmul.f32 0.03125, %v759_v38 }
 0x42e   :  { %v761_v39 = vadd.f32 1e-05, %v760_v1 }
 0x430   :  { %1345 = vrsqrt.f32 %v761_v39 }
 0x43a   :  { %v1346_v41 = vpop.eup %1345 }
 0x43b   :  { %v764_v35 = vmul.f32 %v1346_v41, %v763_v40 }
 0x43d   :  { %v766_v42 = vmul.f32 %v764_v35, %v738_v11  ;;  %v772_v43 = vrot.slane %v764_v35, %v1665_v21 }
 0x43f   :  { %v776_v44 = vmul.f32 %v772_v43, %v723_v61  ;;  %v767_v45 = vsub.f32 %v765_v34, %v766_v42  ;;  %v777_v46 = vmul.f32 %v772_v43, %v724_v60  ;;  %v774_v8 = vmul.f32 %v772_v43, %v721_v53 }
 0x440   :  { %v775_v48 = vmul.f32 %v772_v43, %v722_v52 }
 0x441   :  { %v782_v47 = vrot.slane %v767_v45, %v1665_v21 }
 0x443   :  { %v784_v49 = vadd.f32 %v782_v47, %v774_v8  ;;  %v785_v50 = vadd.f32 %v782_v47, %v775_v48  ;;  %v786_v51 = vadd.f32 %v782_v47, %v776_v44  ;;  %v787_v54 = vadd.f32 %v782_v47, %v777_v46  ;;  %v1092_v8 = vld [vmem:[%s1769_s12] sm:$0x1]  ;;  %s1437_s12 = scalar_lea.vmem %s1128_s27, 512 }
 0x444   :  { %p1438_p4 = scmp.ne.s32.totalorder %s1128_s27, %s1437_s12  ;;  %p1443_p6 = scmp.lt.s32.totalorder %s1437_s12, %s1437_s12 }
 0x445   :  { %1276 = vmatprep.mubr.msk.f32.mxu1 %vm395_vm5, %v784_v49  ;;  %v1094_v49 = vld [vmem:[%s1770_s13] sm:$0x1] }
 0x446   :  { %1277 = vmatmul.mubr.msk.f32.vlgmr.msra.gmra.mrb[6].mxu1 %vm395_vm5, %v785_v50  ;;  %p1444_p7 = por %p1443_p6, %p1442_p5 }
 0x447   :  { %1279 = vmatprep.mubr.msk.f32.mxu1 %vm395_vm5, %v786_v51 }
 0x448   :  { %p1445_p8 = pnand %p1444_p7, %p1438_p4 }
 0x44a   :  { %1280 = vmatmul.mubr.msk.f32.gmra.mrb[8].mxu1 %vm395_vm5, %v787_v54 }
 0x519   :  { %v1278_v55 = vpop.f32.mrb[6].mxu1 }
 0x51a   :  { %v870_v56 = vpop.f32.mrb[7].mxu1 }
 0x51b   :  { %v1328_v57 = vpack.c.bf16 %v1278_v55, %v870_v56 }
 0x51d   :  { %v1281_v58 = vpop.f32.mrb[8].mxu1  ;;  %1329 = vmatprep.subr.bf16.mxu0 %v1328_v57 }
 0x51e   :  { %v880_v53 = vpop.f32.mrb[9].mxu1  ;;  %1331 = vmatpush3.bf16.msra.mxu0 %v1328_v57 }
 0x51f   :  { %v1332_v52 = vpack.c.bf16 %v1281_v58, %v880_v53 }
 0x521   :  { %1287 = vmatmul.mubr.msk.f32.vlgmr.msra.gmra.mrb[10].mxu0 %vm119_vm1, %v1638_v16  ;;  %1333 = vmatprep.subr.bf16.mxu0 %v1332_v52 }
 0x522   :  { %1335 = vmatpush3.bf16.msra.mxu0 %v1332_v52  ;;  %1293 = vmatprep.mubr.msk.f32.mxu0 %vm119_vm1, %v1636_v15 }
 0x525   :  { %1294 = vmatmul.mubr.msk.f32.vlgmr.msra.gmra.mrb[12].mxu0 %vm119_vm1, %v1642_v17 }
 0x5f4   :  { %v1288_v60 = vpop.f32.mrb[10].mxu0 }
 0x5f5   :  { %v1047_v61 = vadd.f32 %v1288_v60, %v1172_v59  ;;  %v955_v62 = vpop.f32.mrb[11].mxu0 }
 0x5f6   :  { %v1046_v63 = vadd.f32 %v1172_v59, %v955_v62 }
 0x5f7   :  { %v1051_v0 = vmax.f32 %v1047_v61, 0.0 }
 0x5f8   :  { %v1050_v2 = vmax.f32 %v1046_v63, 0.0  ;;  %v1295_v3 = vpop.f32.mrb[12].mxu0 }
 0x5f9   :  { %v1049_v16 = vadd.f32 %v1295_v3, %v1172_v59  ;;  %v1030_v4 = vpop.f32.mrb[13].mxu0  ;;  %v1055_v5 = vsel %vm395_vm5, %v1051_v0, 0.0 }
 0x5fa   :  { %v1054_v15 = vsel %vm395_vm5, %v1050_v2, 0.0  ;;  %v1048_v6 = vadd.f32 %v1172_v59, %v1030_v4 }
 0x5fb   :  { %v1053_v7 = vmax.f32 %v1049_v16, 0.0  ;;  %v1056_v9 = vadd.f32 %v1055_v5, %v1054_v15 }
 0x5fc   :  { %v1052_v17 = vmax.f32 %v1048_v6, 0.0 }
 0x5fd   :  { %v1059_v12 = vsel %vm395_vm5, %v1053_v7, 0.0 }
 0x5fe   :  { %v1057_v10 = vsel %vm395_vm5, %v1052_v17, 0.0 }
 0x5ff   :  { %v1058_v11 = vadd.f32 %v1057_v10, %v1056_v9 }
 0x601   :  { %v1060_v13 = vadd.f32 %v1059_v12, %v1058_v11 }
 0x603   :  { %v1061_v14 = vrot.slane %v1060_v13, 4 }
 0x605   :  { %v1062_v18 = vadd.f32 %v1061_v14, %v1060_v13 }
 0x607   :  { %v1063_v19 = vrot.slane %v1062_v18, 2 }
 0x609   :  { %v1064_v20 = vadd.f32 %v1063_v19, %v1062_v18 }
 0x60b   :  { %v1065_v22 = vrot.slane %v1064_v20, 1 }
 0x60d   :  { %v1066_v23 = vadd.f32 %v1065_v22, %v1064_v20 }
 0x60f   :  { %v1067_v24 = vmul.f32 0.03125, %v1066_v23 }
 0x611   :  { %v1068_v25 = vsub.f32 %v1050_v2, %v1067_v24  ;;  %v1069_v26 = vsub.f32 %v1051_v0, %v1067_v24  ;;  %v1070_v27 = vsub.f32 %v1052_v17, %v1067_v24  ;;  %v1071_v28 = vsub.f32 %v1053_v7, %v1067_v24 }
 0x613   :  { %v1072_v29 = vmul.f32 %v1068_v25, %v1068_v25  ;;  %v1073_v30 = vmul.f32 %v1069_v26, %v1069_v26  ;;  %v1074_v31 = vmul.f32 %v1070_v27, %v1070_v27  ;;  %v1075_v32 = vmul.f32 %v1071_v28, %v1071_v28 }
 0x615   :  { %v1076_v33 = vsel %vm395_vm5, %v1072_v29, 0.0  ;;  %v1077_v36 = vsel %vm395_vm5, %v1073_v30, 0.0  ;;  %v1079_v38 = vsel %vm395_vm5, %v1074_v31, 0.0  ;;  %v1081_v39 = vsel %vm395_vm5, %v1075_v32, 0.0 }
 0x616   :  { %v1078_v37 = vadd.f32 %v1077_v36, %v1076_v33 }
 0x618   :  { %v1080_v1 = vadd.f32 %v1079_v38, %v1078_v37 }
 0x61a   :  { %v1082_v40 = vadd.f32 %v1081_v39, %v1080_v1 }
 0x61c   :  { %v1083_v41 = vrot.slane %v1082_v40, 4 }
 0x61e   :  { %v1084_v35 = vadd.f32 %v1083_v41, %v1082_v40 }
 0x620   :  { %v1085_v34 = vrot.slane %v1084_v35, 2 }
 0x622   :  { %v1086_v42 = vadd.f32 %v1085_v34, %v1084_v35 }
 0x624   :  { %v1087_v43 = vrot.slane %v1086_v42, 1 }
 0x626   :  { %v1088_v44 = vadd.f32 %v1087_v43, %v1086_v42 }
 0x628   :  { %v1089_v45 = vmul.f32 0.03125, %v1088_v44 }
 0x62a   :  { %v1090_v46 = vadd.f32 1e-05, %v1089_v45 }
 0x62c   :  { %1347 = vrsqrt.f32 %v1090_v46 }
 0x636   :  { %v1348_v47 = vpop.eup %1347 }
 0x637   :  { %v1093_v48 = vmul.f32 %v1348_v47, %v1092_v8 }
 0x639   :  { %v1095_v50 = vmul.f32 %v1093_v48, %v1067_v24  ;;  %v1101_v51 = vrot.slane %v1093_v48, %v1665_v21 }
 0x63b   :  { %v1096_v54 = vsub.f32 %v1094_v49, %v1095_v50  ;;  %v1105_v55 = vmul.f32 %v1101_v51, %v1052_v17  ;;  %v1106_v56 = vmul.f32 %v1101_v51, %v1053_v7  ;;  %v1103_v58 = vmul.f32 %v1101_v51, %v1050_v2 }
 0x63c   :  { %v1104_v53 = vmul.f32 %v1101_v51, %v1051_v0 }
 0x63d   :  { %v1111_v57 = vrot.slane %v1096_v54, %v1665_v21 }
 0x63f   :  { %v1115_v52 = vadd.f32 %v1111_v57, %v1105_v55  ;;  %v1113_v59 = vadd.f32 %v1111_v57, %v1103_v58  ;;  %v1114_v60 = vadd.f32 %v1111_v57, %v1104_v53  ;;  %v1116_v61 = vadd.f32 %v1111_v57, %v1106_v56 }
 0x641   :  { %1120 = vst.msk [vmem:[#allocation10 + $0x10] sm:$0xff] %vm395_vm5, %v1115_v52  ;;  %1117 = vst.msk [vmem:[#allocation10] sm:$0xff] %vm395_vm5, %v1113_v59 }
 0x642   :  { %1118 = vst.msk [vmem:[#allocation10 + $0x8] sm:$0xff] %vm395_vm5, %v1114_v60  ;;  %1121 = vst.msk [vmem:[#allocation10 + $0x18] sm:$0xff] %vm395_vm5, %v1116_v61 }
 0x643   :  { %1448 = shalt.err (!%p1445_p8)
}
 0x644   :  { %s1449_s6 = scalar_lea.hbm %s1771_s14, 512 }
 0x645   :  { %p1450_p9 = scmp.ne.s32.totalorder %s1771_s14, %s1449_s6  ;;  %p1453_p10 = scmp.lt.u32.totalorder %s1449_s6, %s1771_s14 }
 0x647   :  { %p1455_p11 = pnand %p1453_p10, %p1450_p9 }
 0x649   :  { %1458 = shalt.err (!%p1455_p11)
}
 0x64a   :  { %1133 = dma.vmem_to_hbm [thread:$0]  %s1128_s27, 512, %s1771_s14, [#allocation4], %s1470_s2, %s1470_s2, %s1471_s16  }
 0x64b   :  { %1465 = dma.done.wait [#allocation4], 512  }
 0x64c   :  { %1466 = vsyncadd [#allocation4], 4294966784 }
 0x64d   :  { %1137 = vsyncpa [#allocation3], 1 }
 0x64e   :  { %1138 = vsyncpa [#allocation6], 1 }
 0x64f   :  { %1139 = vsyncpa [#allocation9], 1 }
 0x650   :  { %1140 = vsyncpa [#allocation4], 1 }

</bundles_post_ra>
